<compile_context>
chip_gen: v7x
topology: tpu7x:2x2x1
jax: 0.10.0
libtpu: 0.0.40
codegen_flags: <defaults>
</compile_context>

<pallas_src>
import functools

import jax
import jax.numpy as jnp
from jax.experimental import pallas as pl
from jax.experimental.pallas import tpu as pltpu


def _fused_gcnn_kernel(x_ref, hbdT_ref, *rest, n_layers):
    """Entire forward pass, fused.

    x_ref:    (F0, B*N)      input with batch folded onto the lane (node) axis
    hbdT_ref: (B*N, B*N)     block-diagonal (over batch) pre-transposed graph filter H^T
    rest:     n_layers conv weights (F_{l+1}, F_l) followed by the output ref (F_last, B*N)
    """
    w_refs = rest[:n_layers]
    o_ref = rest[n_layers]

    y = x_ref[...]
    hbdT = hbdT_ref[...]
    for l in range(n_layers):
        # 1x1 Conv1d == channel-mixing matmul on the MXU (batch already folded onto lanes).
        y = jnp.dot(w_refs[l][...], y, preferred_element_type=jnp.float32)
        if l < n_layers - 1:
            # Graph filter: y[f, b*N + i] = sum_j H[i, j] * y[f, b*N + j].
            # H^T was pre-transposed and block-diagonalized in the wrapper, so this is a
            # plain matmul with no in-kernel transpose or reshape.
            y = jnp.dot(y, hbdT, preferred_element_type=jnp.float32)
            y = jnp.maximum(y, 0.0)  # f32 epilogue on the accumulator
    o_ref[...] = y.astype(o_ref.dtype)


def gcnn_forward(x, weights, H):
    """Fused GCNN forward. x: (B, F0, N); weights: list of (F_{l+1}, F_l); H: (N, N)."""
    B, F0, N = x.shape
    n_layers = len(weights)
    F_last = weights[-1].shape[0]

    # Layout plumbing happens once in the wrapper (not per kernel step):
    #   - fold batch onto the lane axis -> last dim B*N (lane-densest layout at this size),
    #   - pre-transpose + block-diagonalize H so the filter is a single plain matmul.
    xt = jnp.transpose(x, (1, 0, 2)).reshape(F0, B * N)          # (F0, B*N)
    hbdT = jnp.kron(jnp.eye(B, dtype=H.dtype), H.T)              # (B*N, B*N)

    # TODO(synk): at large N, tile H over node blocks with a K-accumulation grid axis
    # (f32 VMEM accumulator) instead of keeping the full (B*N, B*N) filter resident
    # (v7x has 64 MiB VMEM), and cast matmul operands to bf16 with f32 accumulation on
    # v6e/v7x. Not worthwhile at these toy shapes, so operands stay f32 here.

    kernel = functools.partial(_fused_gcnn_kernel, n_layers=n_layers)
    vmem = pltpu.MemorySpace.VMEM
    out_flat = pl.pallas_call(
        kernel,
        out_shape=jax.ShapeDtypeStruct((F_last, B * N), x.dtype),
        in_specs=[pl.BlockSpec(memory_space=vmem)] * (2 + n_layers),
        out_specs=pl.BlockSpec(memory_space=vmem),
    )(xt, hbdT, *weights)

    out = jnp.transpose(out_flat.reshape(F_last, B, N), (1, 0, 2))  # back to (B, F_last, N)
    return jnp.squeeze(out)


def gcnn_reference(x, weights, H):
    """Pure-JAX reference mirroring the PyTorch module (for correctness check)."""
    n_layers = len(weights)
    out = x
    for l, w in enumerate(weights):
        out = jnp.einsum("oi,bin->bon", w, out)
        if l < n_layers - 1:
            out = jnp.einsum("ij,bfj->bfi", H, out)
            out = jnp.maximum(out, 0.0)
    return jnp.squeeze(out)


if __name__ == "__main__":
    # Small shapes consistent with the module: features = [4, 32, 8], N graph nodes = 16.
    features = [4, 32, 8]
    N = 16
    B = 2
    input_std = 0.01
    w_std_base = 0.01

    key = jax.random.PRNGKey(0)
    k_h, k_x, *k_ws = jax.random.split(key, 2 + len(features) - 1)

    # Deterministic fixed graph filter H (N x N), symmetric for realism (kernel handles
    # general non-symmetric H as well).
    H_raw = jax.random.normal(k_h, (N, N), dtype=jnp.float32)
    H = 0.5 * (H_raw + H_raw.T)

    # Conv1d (kernel_size=1) weights with the trailing size-1 kernel dim dropped.
    w_std = w_std_base / jnp.sqrt(jnp.asarray(features, dtype=jnp.float32))
    weights = [
        (w_std[l] * jax.random.normal(k_ws[l], (features[l + 1], features[l]), dtype=jnp.float32))
        for l in range(len(features) - 1)
    ]

    # TODO(synk): the module's unused `self.input` Parameter and the S -> edge_index
    # bookkeeping take no part in forward(), so they are not materialized here.

    # Input x: [B, F0, N].
    x = input_std / jnp.sqrt(jnp.float32(N)) * jax.random.normal(
        k_x, (B, features[0], N), dtype=jnp.float32
    )

    out = gcnn_forward(x, weights, H)
    out = jax.block_until_ready(out)

    ref = gcnn_reference(x, weights, H)
    assert out.shape == ref.shape
    assert jnp.allclose(out, ref, atol=1e-6, rtol=1e-5)

    print("KERNEL_OK")
</pallas_src>

<mosaic_0001>
module attributes {stable_mosaic.version = 11 : i64} {
  func.func @_fused_gcnn_kernel(%arg0: memref<4x32xf32, #tpu.memory_space<vmem>>, %arg1: memref<32x32xf32, #tpu.memory_space<vmem>>, %arg2: memref<32x4xf32, #tpu.memory_space<vmem>>, %arg3: memref<8x32xf32, #tpu.memory_space<vmem>>, %arg4: memref<8x32xf32, #tpu.memory_space<vmem>>) attributes {dimension_semantics = [], scalar_prefetch = 0 : i64, scratch_operands = 0 : i64, tpu.core_type = #tpu.core_type<tc>} {
    %c0 = arith.constant 0 : index
    %c0_0 = arith.constant 0 : index
    %0 = vector.load %arg0[%c0, %c0_0] : memref<4x32xf32, #tpu.memory_space<vmem>>, vector<4x32xf32>
    %c0_1 = arith.constant 0 : index
    %c0_2 = arith.constant 0 : index
    %1 = vector.load %arg1[%c0_1, %c0_2] : memref<32x32xf32, #tpu.memory_space<vmem>>, vector<32x32xf32>
    %c0_3 = arith.constant 0 : index
    %c0_4 = arith.constant 0 : index
    %2 = vector.load %arg2[%c0_3, %c0_4] : memref<32x4xf32, #tpu.memory_space<vmem>>, vector<32x4xf32>
    %cst = arith.constant dense<0.000000e+00> : vector<32x32xf32>
    %3 = tpu.matmul %2, %0, %cst {dimension_numbers = #tpu.dot_dimension_numbers<[1], [0], [0], [1], [0, 0, 1, 1], [], []>} : vector<32x4xf32>, vector<4x32xf32>, vector<32x32xf32> -> vector<32x32xf32>
    %cst_5 = arith.constant dense<0.000000e+00> : vector<32x32xf32>
    %4 = tpu.matmul %3, %1, %cst_5 {dimension_numbers = #tpu.dot_dimension_numbers<[1], [0], [0], [1], [0, 0, 1, 1], [], []>} : vector<32x32xf32>, vector<32x32xf32>, vector<32x32xf32> -> vector<32x32xf32>
    %cst_6 = arith.constant 0.000000e+00 : f32
    %5 = vector.broadcast %cst_6 : f32 to vector<32x32xf32>
    %6 = arith.maximumf %4, %5 : vector<32x32xf32>
    %c0_7 = arith.constant 0 : index
    %c0_8 = arith.constant 0 : index
    %7 = vector.load %arg3[%c0_7, %c0_8] : memref<8x32xf32, #tpu.memory_space<vmem>>, vector<8x32xf32>
    %cst_9 = arith.constant dense<0.000000e+00> : vector<8x32xf32>
    %8 = tpu.matmul %7, %6, %cst_9 {dimension_numbers = #tpu.dot_dimension_numbers<[1], [0], [0], [1], [0, 0, 1, 1], [], []>} : vector<8x32xf32>, vector<32x32xf32>, vector<8x32xf32> -> vector<8x32xf32>
    %c0_10 = arith.constant 0 : index
    %c0_11 = arith.constant 0 : index
    %9 = vector.load %arg4[%c0_10, %c0_11] : memref<8x32xf32, #tpu.memory_space<vmem>>, vector<8x32xf32>
    tpu.vector_store %arg4[%c0_10, %c0_11], %8 {strides = array<i32>} : memref<8x32xf32, #tpu.memory_space<vmem>>, vector<8x32xf32>,
    return
  }
}

</mosaic_0001>

<bundles_post_ra>
// kernel: tpu_custom_call.1
= control target key start
LH: loop header
LB: loop body
LE: loop exit
PB: predicated region body
PF: predicated region fallthrough
CT: control target
= control target key end

     0   :  { %9 = vsyncpa [#allocation3], 0  ;;  %s552_s0 = inlined_call_operand.hbm [shape: f32[4,32], index: 0, kind: input, shape index: {}]   ;;  %s553_s1 = inlined_call_operand.vmem [shape: f32[32,32], index: 1, kind: input, shape index: {}]   ;;  %s554_s2 = inlined_call_operand.vmem [shape: f32[32,4], index: 2, kind: input, shape index: {}]   ;;  %s555_s3 = inlined_call_operand.vmem [shape: f32[8,32], index: 3, kind: input, shape index: {}]   ;;  %s556_s4 = inlined_call_operand.hbm [shape: f32[8,32], index: 4, kind: output, shape index: {}]  }
   0x1   :  { %10 = vsyncpa [#allocation4], 0  ;;  %s461_s15 = smov [#allocation2]   ;;  %s413_s19 = scalar_lea.hbm %s552_s0, 64 }
   0x2   :  { %s17_s16 = sshll.u32 %s461_s15, 4  ;;  %p414_p0 = scmp.ne.s32.totalorder %s552_s0, %s413_s19  ;;  %s18_s16 = int_to_ptr.vmem [resolvable:$true] %s17_s16 }
   0x3   :  { %p417_p1 = scmp.lt.u32.totalorder %s413_s19, %s552_s0 }
   0x5   :  { %p419_p2 = pnand %p417_p1, %p414_p0 }
   0x7   :  { %422 = shalt.err (!%p419_p2)
}
   0x8   :  { %s423_s24 = scalar_lea.vmem %s18_s16, 64  ;;  %p428_p4 = scmp.lt.s32.totalorder %s18_s16, %s18_s16 }
   0x9   :  { %p424_p3 = scmp.ne.s32.totalorder %s18_s16, %s423_s24  ;;  %p429_p5 = scmp.lt.s32.totalorder %s423_s24, %s423_s24 }
   0xb   :  { %p430_p6 = por %p429_p5, %p428_p4 }
   0xd   :  { %p431_p7 = pnand %p430_p6, %p424_p3 }
   0xf   :  { %434 = shalt.err (!%p431_p7)
}
  0x10   :  { %20 = dma.hbm_to_vmem [thread:$0]  %s552_s0, 64, %s18_s16, [#allocation3]  }
  0x11   :  { %457 = dma.done.wait [#allocation3], 64  }
  0x12   :  { %458 = vsyncadd [#allocation3], 4294967232  ;;  %vm52_vm0 = vcmask 1043456   ;;  %vm39_vm1 = vcmask 31744   ;;  %v30_v0 = vld [vmem:[#allocation2] sm:$0xf] }
  0x13   :  { %v35_v1 = vld [vmem:[%s554_s2] sm:$0xff]  ;;  %v36_v2 = vld [vmem:[%s554_s2 + $0x8] sm:$0xff]  ;;  %361 = vmatprep.subr.msk.mxu0 %vm52_vm0, %v30_v0  ;;  %v37_v3 = vld [vmem:[%s554_s2 + $0x10] sm:$0xff]  ;;  %vm141_vm2 = vcmask 261120   ;;  %v462_v15 = vmov 0.0|0.0   ;;  %vm463_vm3 = vmmov 0  }
  0x14   :  { %363 = vmatprep.mubr.msk.f32.mxu0 %vm39_vm1, %v35_v1  ;;  %v31_v4 = vld [vmem:[%s553_s1] sm:$0xff]  ;;  %362 = vmatpush3.msk.msra.mxu0 %vm52_vm0, %v30_v0  ;;  %v32_v5 = vld [vmem:[%s553_s1 + $0x8] sm:$0xff]  ;;  %v33_v6 = vld [vmem:[%s553_s1 + $0x10] sm:$0xff]  ;;  %v464_v16 = vmov 0.0   ;;  %s465_s16 = smov [#allocation5]  }
  0x15   :  { %v34_v7 = vld [vmem:[%s553_s1 + $0x18] sm:$0xff]  ;;  %364 = vmatmul.mubr.msk.f32.vlgmr.msra.gmra.mrb[0].mxu0 %vm39_vm1, %v36_v2  ;;  %v394_v8 = vpack.c.bf16 %v32_v5, %v31_v4  ;;  %402 = vmatprep.subr.bf16.mxu0 %v462_v15  ;;  %v243_v27 = vld [vmem:[%s555_s3] sm:$0xff]  ;;  %s324_s17 = sshll.u32 %s465_s16, 4  ;;  %s325_s17 = int_to_ptr.vmem [resolvable:$true] %s324_s17 }
  0x16   :  { %v398_v9 = vpack.c.bf16 %v34_v7, %v33_v6  ;;  %366 = vmatprep.mubr.msk.f32.mxu0 %vm39_vm1, %v37_v3  ;;  %v38_v10 = vld [vmem:[%s554_s2 + $0x18] sm:$0xff]  ;;  %s435_s18 = scalar_lea.vmem %s325_s17, 128  ;;  %p440_p9 = scmp.lt.s32.totalorder %s325_s17, %s325_s17 }
  0x17   :  { %395 = vmatprep.subr.bf16.mxu1 %v394_v8  ;;  %p436_p8 = scmp.ne.s32.totalorder %s325_s17, %s435_s18  ;;  %p441_p10 = scmp.lt.s32.totalorder %s435_s18, %s435_s18 }
  0x18   :  { %397 = vmatpush3.bf16.msra.mxu1 %v394_v8 }
  0x19   :  { %367 = vmatmul.mubr.msk.f32.gmra.mrb[2].mxu0 %vm39_vm1, %v38_v10  ;;  %399 = vmatprep.subr.bf16.mxu1 %v398_v9  ;;  %p442_p11 = por %p441_p10, %p440_p9 }
  0x1a   :  { %391 = vmatprep.mubr.msk.f32.mxu0 %vm463_vm3, %v464_v16 }
  0x1b   :  { %p443_p12 = pnand %p442_p11, %p436_p8 }
  0x1c   :  { %401 = vmatpush3.bf16.msra.mxu1 %v398_v9 }
  0xe8   :  { %v365_v11 = vpop.f32.mrb[0].mxu0 }
  0xe9   :  { %v122_v12 = vpop.f32.mrb[1].mxu0 }
  0xea   :  { %377 = vmatprep.mubr.msk.f32.mxu1 %vm141_vm2, %v122_v12 }
  0xeb   :  { %378 = vmatmul.mubr.msk.f32.vlgmr.msra.gmra.mrb[0].mxu1 %vm141_vm2, %v365_v11 }
  0xec   :  { %v368_v13 = vpop.f32.mrb[2].mxu0 }
  0xed   :  { %v132_v14 = vpop.f32.mrb[3].mxu0 }
  0xee   :  { %380 = vmatprep.mubr.msk.f32.mxu1 %vm141_vm2, %v132_v14 }
  0xef   :  { %381 = vmatmul.mubr.msk.f32.gmra.mrb[2].mxu1 %vm141_vm2, %v368_v13 }
 0x1be   :  { %v379_v17 = vpop.f32.mrb[0].mxu1 }
 0x1bf   :  { %v240_v18 = vmax.f32 %v379_v17, 0.0  ;;  %v220_v19 = vpop.f32.mrb[1].mxu1 }
 0x1c0   :  { %v239_v20 = vmax.f32 %v220_v19, 0.0 }
 0x1c2   :  { %v403_v21 = vpack.c.bf16 %v240_v18, %v239_v20  ;;  %v382_v22 = vpop.f32.mrb[2].mxu1 }
 0x1c3   :  { %v242_v23 = vmax.f32 %v382_v22, 0.0  ;;  %v230_v24 = vpop.f32.mrb[3].mxu1 }
 0x1c4   :  { %v241_v25 = vmax.f32 %v230_v24, 0.0  ;;  %404 = vmatpush3.bf16.msra.mxu0 %v403_v21 }
 0x1c5   :  { %405 = vmatprep.subr.bf16.mxu0 %v462_v15 }
 0x1c6   :  { %v406_v26 = vpack.c.bf16 %v242_v23, %v241_v25 }
 0x1c8   :  { %407 = vmatpush3.bf16.msra.mxu0 %v406_v26 }
 0x1cb   :  { %392 = vmatmul.mubr.msk.f32.vlgmr.msra.gmra.mrb[4].mxu0 %vm141_vm2, %v243_v27 }
 0x29e   :  { %v313_v28 = vpop.f32.mrb[4].mxu0 }
 0x29f   :  { %317 = vst.msk [vmem:[#allocation5] sm:$0xff] %vm141_vm2, %v313_v28  ;;  %v393_v29 = vpop.f32.mrb[5].mxu0 }
 0x2a0   :  { %446 = shalt.err (!%p443_p12)
}
 0x2a1   :  { %s447_s3 = scalar_lea.hbm %s556_s4, 128 }
 0x2a2   :  { %p448_p13 = scmp.ne.s32.totalorder %s556_s4, %s447_s3  ;;  %p451_p0 = scmp.lt.u32.totalorder %s447_s3, %s556_s4 }
 0x2a4   :  { %p453_p1 = pnand %p451_p0, %p448_p13 }
 0x2a6   :  { %456 = shalt.err (!%p453_p1)
}
 0x2a7   :  { %327 = dma.vmem_to_hbm [thread:$0]  %s325_s17, 128, %s556_s4, [#allocation4]  }
 0x2a8   :  { %459 = dma.done.wait [#allocation4], 128  }
 0x2a9   :  { %460 = vsyncadd [#allocation4], 4294967168 }
 0x2aa   :  { %331 = vsyncpa [#allocation3], 1 }
 0x2ab   :  { %332 = vsyncpa [#allocation4], 1 }

</bundles_post_ra>
